<compile_context>
chip_gen: v5e
topology: v5e:2x2
jax: 0.10.0
libtpu: 0.0.40
codegen_flags: <defaults>
</compile_context>

<pallas_src>
import functools
import numpy as np
import jax
import jax.numpy as jnp
from jax.experimental import pallas as pl
from jax.experimental.pallas import tpu as pltpu


# ----------------------------------------------------------------------------
# Fused, tiled matmul kernel: o = act((a @ b) * scale + bias [+ residual])
# ----------------------------------------------------------------------------
def _matmul_body(a_ref, b_ref, s_ref, c_ref, r_ref, o_ref, activation):
    k = pl.program_id(2)

    @pl.when(k == 0)
    def _():
        o_ref[...] = jnp.zeros_like(o_ref)

    # bf16 operands -> MXU native; f32 accumulation directly into the resident output block.
    o_ref[...] += jnp.dot(a_ref[...].astype(jnp.bfloat16), b_ref[...],
                          preferred_element_type=jnp.float32)

    @pl.when(k == pl.num_programs(2) - 1)
    def _():
        y = o_ref[...] * s_ref[...] + c_ref[...]
        if r_ref is not None:
            y = y + r_ref[...]
        if activation == "relu":
            y = jnp.maximum(y, 0.0)
        elif activation == "log_softmax":
            m = jnp.max(y, axis=-1, keepdims=True)
            y = y - m
            y = y - jnp.log(jnp.sum(jnp.exp(y), axis=-1, keepdims=True))
        o_ref[...] = y


def _make_matmul_kernel(activation, has_residual):
    if has_residual:
        def kernel(a_ref, b_ref, s_ref, c_ref, r_ref, o_ref):
            _matmul_body(a_ref, b_ref, s_ref, c_ref, r_ref, o_ref, activation)
    else:
        def kernel(a_ref, b_ref, s_ref, c_ref, o_ref):
            _matmul_body(a_ref, b_ref, s_ref, c_ref, None, o_ref, activation)
    return kernel


def _pick_tile(dim, max_tile, granule):
    """Largest tile <= max_tile that divides dim and is a multiple of granule (else full dim)."""
    if dim <= max_tile:
        return dim
    t = (max_tile // granule) * granule
    while t >= granule:
        if dim % t == 0:
            return t
        t -= granule
    return dim


def matmul_fused(a, b, scale=None, bias=None, activation="none", residual=None,
                 tm_max=512, tn_max=1024, tk_max=512):
    """(M,K)@(K,N) with per-column scale/bias, optional residual add and ReLU/log_softmax."""
    a = a.astype(jnp.float32)
    if b.dtype != jnp.bfloat16:
        b = b.astype(jnp.bfloat16)
    M, K = a.shape
    K2, N = b.shape
    assert K == K2
    if scale is None:
        scale = jnp.ones((N,), jnp.float32)
    if bias is None:
        bias = jnp.zeros((N,), jnp.float32)
    scale = scale.reshape(1, N).astype(jnp.float32)
    bias = bias.reshape(1, N).astype(jnp.float32)

    tm = _pick_tile(M, tm_max, 8)
    tk = _pick_tile(K, tk_max, 128)
    # log_softmax epilogue needs the whole row resident in one tile.
    tn = N if activation == "log_softmax" else _pick_tile(N, tn_max, 128)
    grid = (M // tm, N // tn, K // tk)

    has_residual = residual is not None
    inputs = [a, b, scale, bias]
    in_specs = [
        pl.BlockSpec((tm, tk), lambda i, j, k: (i, k)),
        pl.BlockSpec((tk, tn), lambda i, j, k: (k, j)),
        pl.BlockSpec((1, tn), lambda i, j, k: (0, j)),
        pl.BlockSpec((1, tn), lambda i, j, k: (0, j)),
    ]
    if has_residual:
        inputs.append(residual.astype(jnp.float32))
        in_specs.append(pl.BlockSpec((tm, tn), lambda i, j, k: (i, j)))

    return pl.pallas_call(
        _make_matmul_kernel(activation, has_residual),
        out_shape=jax.ShapeDtypeStruct((M, N), jnp.float32),
        grid=grid,
        in_specs=in_specs,
        out_specs=pl.BlockSpec((tm, tn), lambda i, j, k: (i, j)),
        compiler_params=pltpu.CompilerParams(
            dimension_semantics=("parallel", "parallel", "arbitrary")),
    )(*inputs)


# ----------------------------------------------------------------------------
# Bidirectional LSTM layer: both directions in one kernel, time loop inside.
# ----------------------------------------------------------------------------
def _bilstm_kernel(xp_ref, whh_ref, out_ref, hm_ref, c_ref, *, hidden, chunk):
    """xp_ref: (TC, 2B, 4H) precomputed x@Wih^T + biases (rows <B forward, rows >=B backward on
    reversed time).  whh_ref: (2H, 4H) bf16 = [Whh_fwd^T ; Whh_bwd^T].  hm_ref: masked hidden
    state (2B, 2H) so one matmul drives both recurrences.  State persists across T-chunks."""
    H = hidden
    B2 = c_ref.shape[0]
    B = B2 // 2

    @pl.when(pl.program_id(0) == 0)
    def _():
        hm_ref[...] = jnp.zeros_like(hm_ref)
        c_ref[...] = jnp.zeros_like(c_ref)

    row = jax.lax.broadcasted_iota(jnp.int32, (B2, H), 0)
    fmask_f = (row < B).astype(jnp.float32)      # 1 on forward-direction rows
    fmask_b = 1.0 - fmask_f                      # 1 on backward-direction rows

    def step(t, carry):
        gates = xp_ref[t] + jnp.dot(hm_ref[...], whh_ref[...],
                                    preferred_element_type=jnp.float32)
        i = jax.nn.sigmoid(gates[:, 0 * H:1 * H])
        f = jax.nn.sigmoid(gates[:, 1 * H:2 * H])
        g = jnp.tanh(gates[:, 2 * H:3 * H])
        o = jax.nn.sigmoid(gates[:, 3 * H:4 * H])
        c_new = f * c_ref[...] + i * g
        h_new = o * jnp.tanh(c_new)
        c_ref[...] = c_new
        # masked state layout: forward rows carry h in cols [0:H], backward rows in cols [H:2H]
        hm_ref[:, 0:H] = (h_new * fmask_f).astype(hm_ref.dtype)
        hm_ref[:, H:2 * H] = (h_new * fmask_b).astype(hm_ref.dtype)
        out_ref[t] = h_new
        return carry

    jax.lax.fori_loop(0, chunk, step, 0)


def bilstm_layer(xp, whh_cat, *, hidden, chunk=64):
    """xp: (T, 2B, 4H) f32;  whh_cat: (2H, 4H) bf16.  Returns (T, 2B, H) f32 hidden states."""
    T, B2, G = xp.shape
    H = hidden
    TC = min(T, chunk)
    Tp = ((T + TC - 1) // TC) * TC
    if Tp != T:
        # Padding at the *end* of time is safe: the recurrence is causal in the processed order
        # and padded outputs are sliced off below.
        xp = jnp.pad(xp, ((0, Tp - T), (0, 0), (0, 0)))

    out = pl.pallas_call(
        functools.partial(_bilstm_kernel, hidden=H, chunk=TC),
        out_shape=jax.ShapeDtypeStruct((Tp, B2, H), jnp.float32),
        grid=(Tp // TC,),
        in_specs=[
            pl.BlockSpec((TC, B2, G), lambda c: (c, 0, 0)),
            pl.BlockSpec((2 * H, G), lambda c: (0, 0)),
        ],
        out_specs=pl.BlockSpec((TC, B2, H), lambda c: (c, 0, 0)),
        scratch_shapes=[pltpu.VMEM((B2, 2 * H), jnp.bfloat16),   # masked hidden state
                        pltpu.VMEM((B2, H), jnp.float32)],       # cell state
        compiler_params=pltpu.CompilerParams(dimension_semantics=("arbitrary",)),
    )(xp.astype(jnp.float32), whh_cat)
    return out[:T]


# ----------------------------------------------------------------------------
# Glue: BN folding, parameter prep, packed-sequence emulation
# ----------------------------------------------------------------------------
def bn_fold(bn, eps=1e-5):
    scale = bn["gamma"] / jnp.sqrt(bn["rv"] + eps)
    bias = bn["beta"] - bn["rm"] * scale
    return scale, bias


def reverse_padded_tb(x, lengths, T):
    """x: (T, B, D). Flip each sequence within its valid length; padded tail set to 0."""
    t_idx = jnp.arange(T)[:, None]
    valid = t_idx < lengths[None, :]
    rev_idx = jnp.where(valid, lengths[None, :] - 1 - t_idx, 0)
    out = jnp.take_along_axis(x, rev_idx[:, :, None], axis=0)
    return jnp.where(valid[:, :, None], out, 0.0)


def init_params(key, input_size, output_size):
    H, emb, lin1 = 256, 256, 2048
    keys = iter(jax.random.split(key, 64))

    def u(shape, fan_in):
        b = 1.0 / np.sqrt(fan_in)
        return jax.random.uniform(next(keys), shape, jnp.float32, -b, b)

    p = {}
    p["conv1_w"] = u((emb, input_size), input_size)       # Conv1d k=1
    p["conv2_w"] = u((emb, emb, 3), emb * 3)              # Conv1d k=3
    p["conv3_w"] = u((emb, emb), emb)                     # Conv1d k=1
    p["convd_w"] = u((emb, input_size), input_size)       # downsample Conv1d k=1
    for name, n in [("bn1", emb), ("bn2", emb), ("bn3", emb), ("bn_ds", emb), ("batchnorm1", lin1)]:
        p[name] = {"gamma": jnp.ones((n,), jnp.float32),
                   "beta": jnp.zeros((n,), jnp.float32),
                   "rm": jnp.zeros((n,), jnp.float32),
                   "rv": jnp.ones((n,), jnp.float32)}
    lstm = {}
    for layer in range(4):
        din = emb if layer == 0 else 2 * H
        for d in range(2):
            lstm[(layer, d)] = {
                "Wih": u((4 * H, din), H),
                "Whh": u((4 * H, H), H),
                "bih": u((4 * H,), H),
                "bhh": u((4 * H,), H),
            }
    p["lstm"] = lstm
    p["lin1_w"] = u((lin1, 2 * H), 2 * H)
    p["lin1_b"] = u((lin1,), 2 * H)
    p["cls_w"] = u((output_size, lin1), lin1)
    p["cls_b"] = u((output_size,), lin1)
    return p


def prepare_params(p):
    """One-time transposes / BN folds / bf16 weight casts (kept out of the hot path)."""
    q = {}
    s1, b1 = bn_fold(p["bn1"])
    q["conv1"] = (p["conv1_w"].T.astype(jnp.bfloat16), s1, b1)
    s2, b2 = bn_fold(p["bn2"])
    w2 = p["conv2_w"].transpose(2, 1, 0).reshape(-1, p["conv2_w"].shape[0])   # (3*emb, emb)
    q["conv2"] = (w2.astype(jnp.bfloat16), s2, b2)
    s3, b3 = bn_fold(p["bn3"])
    q["conv3"] = (p["conv3_w"].T.astype(jnp.bfloat16), s3, b3)
    sd, bd = bn_fold(p["bn_ds"])
    q["convd"] = (p["convd_w"].T.astype(jnp.bfloat16), sd, bd)

    q["lstm"] = []
    for layer in range(4):
        pf, pb = p["lstm"][(layer, 0)], p["lstm"][(layer, 1)]
        q["lstm"].append({
            "wih_f": pf["Wih"].T.astype(jnp.bfloat16),
            "wih_b": pb["Wih"].T.astype(jnp.bfloat16),
            "b_f": pf["bih"] + pf["bhh"],
            "b_b": pb["bih"] + pb["bhh"],
            "whh": jnp.concatenate([pf["Whh"].T, pb["Whh"].T], axis=0).astype(jnp.bfloat16),
        })

    sl, bl = bn_fold(p["batchnorm1"])
    q["lin1"] = (p["lin1_w"].T.astype(jnp.bfloat16), sl, p["lin1_b"] * sl + bl)
    q["cls"] = (p["cls_w"].T.astype(jnp.bfloat16), p["cls_b"])
    return q


def emb_resnet_forward(prep, x, lx):
    """x: (B, T, input_size) float32, lx: numpy int lengths (B,). Returns (log_probs, lengths)."""
    B, T, Cin = x.shape
    stride = 2
    H = prep["lstm"][0]["whh"].shape[0] // 2

    # Everything runs in (T, B, C) layout -> no transposes around the LSTM scans.
    x_tb = jnp.transpose(x.astype(jnp.float32), (1, 0, 2))            # (T, B, Cin)

    # ---- Bottleneck embedding (conv1d as fused matmuls) ----
    w1, s1, b1 = prep["conv1"]
    emb = w1.shape[1]
    y1 = matmul_fused(x_tb.reshape(T * B, Cin), w1, s1, b1, "relu").reshape(T, B, emb)

    # conv2: k=3, stride=2, pad=1 -> strided shifted windows along time (no gather)
    T_out = (T - 1) // stride + 1
    xpad = jnp.pad(y1, ((1, 1), (0, 0), (0, 0)))
    # TODO(synk): could stream the 3 shifted windows as extra K-steps inside the fused matmul
    # instead of materializing the 3x patches slab.
    patches = jnp.concatenate([xpad[j::stride][:T_out] for j in range(3)], axis=-1)
    w2, s2, b2 = prep["conv2"]
    y2 = matmul_fused(patches.reshape(T_out * B, 3 * emb), w2, s2, b2, "relu")

    # conv3 + bn3 with the downsample residual and final ReLU fused into the epilogue
    wd, sd, bd = prep["convd"]
    ident = matmul_fused(x_tb[::stride][:T_out].reshape(T_out * B, Cin), wd, sd, bd, "none")
    w3, s3, b3 = prep["conv3"]
    seq = matmul_fused(y2, w3, s3, b3, "relu", residual=ident).reshape(T_out, B, emb)
    # dropout1: identity in eval mode

    # ---- packed-sequence bookkeeping ----
    lx1 = np.ceil(np.asarray(lx, dtype=np.float64) / stride).astype(np.int32)
    lengths = jnp.asarray(lx1, dtype=jnp.int32)
    mask = jnp.arange(T_out)[:, None] < lengths[None, :]              # (T_out, B)
    seq = jnp.where(mask[:, :, None], seq, 0.0)

    # ---- 4-layer bidirectional LSTM (one kernel per layer, both directions fused) ----
    for lp in prep["lstm"]:
        D = seq.shape[-1]
        rev = reverse_padded_tb(seq, lengths, T_out)
        xp_f = matmul_fused(seq.reshape(T_out * B, D), lp["wih_f"], None, lp["b_f"], "none")
        xp_b = matmul_fused(rev.reshape(T_out * B, D), lp["wih_b"], None, lp["b_b"], "none")
        xp = jnp.concatenate([xp_f.reshape(T_out, B, 4 * H),
                              xp_b.reshape(T_out, B, 4 * H)], axis=1)  # (T_out, 2B, 4H)
        hs = bilstm_layer(xp, lp["whh"], hidden=H)                     # (T_out, 2B, H)
        h_b = reverse_padded_tb(hs[:, B:, :], lengths, T_out)
        seq = jnp.concatenate([hs[:, :B, :], h_b], axis=-1)            # (T_out, B, 2H)
        seq = jnp.where(mask[:, :, None], seq, 0.0)   # pad_packed zeros / inter-layer dropout id.

    # pad_packed_sequence pads only to the longest sequence in the batch
    T_max = int(np.max(lx1))
    seq = seq[:T_max]                                                  # (T_max, B, 2H)

    # ---- head: linear1 + folded batchnorm1 + relu, then cls_layer with fused log_softmax ----
    wl, sl, bl = prep["lin1"]
    y = matmul_fused(seq.reshape(T_max * B, 2 * H), wl, sl, bl, "relu")
    wc, bc = prep["cls"]
    logp = matmul_fused(y, wc, None, bc, "log_softmax")
    logp = jnp.transpose(logp.reshape(T_max, B, -1), (1, 0, 2))        # (B, T_max, out)
    return logp, lengths


# ----------------------------------------------------------------------------
if __name__ == "__main__":
    key = jax.random.PRNGKey(0)
    B, T, input_size, output_size = 2, 16, 64, 32
    kx, kp = jax.random.split(key)
    x = jax.random.normal(kx, (B, T, input_size), jnp.float32)
    lx = np.array([16, 11], dtype=np.int32)

    params = init_params(kp, input_size, output_size)
    prep = prepare_params(params)
    logp, lengths = emb_resnet_forward(prep, x, lx)
    jax.block_until_ready(logp)
    jax.block_until_ready(lengths)

    T_max = int(np.max(np.ceil(lx / 2)))
    assert logp.shape == (B, T_max, output_size), logp.shape
    assert lengths.shape == (B,)
    # log_softmax sanity: probabilities sum to 1 along the class dim
    np.testing.assert_allclose(np.exp(np.asarray(logp)).sum(-1), 1.0, rtol=1e-3, atol=1e-3)
    print("KERNEL_OK")
</pallas_src>

<mosaic_0001>
module attributes {stable_mosaic.version = 11 : i64} {
  func.func @kernel(%arg0: i32, %arg1: i32, %arg2: i32, %arg3: memref<32x64xf32, #tpu.memory_space<vmem>>, %arg4: memref<64x256xbf16, #tpu.memory_space<vmem>>, %arg5: memref<1x256xf32, #tpu.memory_space<vmem>>, %arg6: memref<1x256xf32, #tpu.memory_space<vmem>>, %arg7: memref<32x256xf32, #tpu.memory_space<vmem>>) attributes {dimension_semantics = [#tpu.dimension_semantics<parallel>, #tpu.dimension_semantics<parallel>, #tpu.dimension_semantics<arbitrary>], iteration_bounds = array<i64: 1, 1, 1>, scalar_prefetch = 0 : i64, scratch_operands = 0 : i64, tpu.core_type = #tpu.core_type<tc>, window_params = [{transform_indices = @transform_0, window_bounds = array<i64: 32, 64>}, {transform_indices = @transform_1, window_bounds = array<i64: 64, 256>}, {transform_indices = @transform_2, window_bounds = array<i64: 1, 256>}, {transform_indices = @transform_3, window_bounds = array<i64: 1, 256>}, {transform_indices = @transform_4, window_bounds = array<i64: 32, 256>}]} {
    %c0_i32 = arith.constant 0 : i32
    %0 = arith.cmpi eq, %arg2, %c0_i32 : i32
    %1 = arith.extui %0 : i1 to i32
    %c0_i32_0 = arith.constant 0 : i32
    %2 = arith.cmpi ne, %1, %c0_i32_0 : i32
    scf.if %2 {
      %cst_10 = arith.constant 0.000000e+00 : f32
      %13 = vector.broadcast %cst_10 : f32 to vector<32x256xf32>
      %c0_11 = arith.constant 0 : index
      %c0_12 = arith.constant 0 : index
      %14 = vector.load %arg7[%c0_11, %c0_12] : memref<32x256xf32, #tpu.memory_space<vmem>>, vector<32x256xf32>
      tpu.vector_store %arg7[%c0_11, %c0_12], %13 {strides = array<i32>} : memref<32x256xf32, #tpu.memory_space<vmem>>, vector<32x256xf32>,
    } else {
    }
    %c0 = arith.constant 0 : index
    %c0_1 = arith.constant 0 : index
    %3 = vector.load %arg7[%c0, %c0_1] : memref<32x256xf32, #tpu.memory_space<vmem>>, vector<32x256xf32>
    %c0_2 = arith.constant 0 : index
    %c0_3 = arith.constant 0 : index
    %4 = vector.load %arg3[%c0_2, %c0_3] : memref<32x64xf32, #tpu.memory_space<vmem>>, vector<32x64xf32>
    %5 = arith.truncf %4 : vector<32x64xf32> to vector<32x64xbf16>
    %c0_4 = arith.constant 0 : index
    %c0_5 = arith.constant 0 : index
    %6 = vector.load %arg4[%c0_4, %c0_5] : memref<64x256xbf16, #tpu.memory_space<vmem>>, vector<64x256xbf16>
    %cst = arith.constant dense<0.000000e+00> : vector<32x256xf32>
    %7 = tpu.matmul %5, %6, %cst {dimension_numbers = #tpu.dot_dimension_numbers<[1], [0], [0], [1], [0, 0, 1, 1], [], []>} : vector<32x64xbf16>, vector<64x256xbf16>, vector<32x256xf32> -> vector<32x256xf32>
    %8 = arith.addf %3, %7 : vector<32x256xf32>
    %c0_6 = arith.constant 0 : index
    %c0_7 = arith.constant 0 : index
    %9 = vector.load %arg7[%c0_6, %c0_7] : memref<32x256xf32, #tpu.memory_space<vmem>>, vector<32x256xf32>
    tpu.vector_store %arg7[%c0_6, %c0_7], %8 {strides = array<i32>} : memref<32x256xf32, #tpu.memory_space<vmem>>, vector<32x256xf32>,
    %c0_i32_8 = arith.constant 0 : i32
    %10 = arith.cmpi eq, %arg2, %c0_i32_8 : i32
    %11 = arith.extui %10 : i1 to i32
    %c0_i32_9 = arith.constant 0 : i32
    %12 = arith.cmpi ne, %11, %c0_i32_9 : i32
    scf.if %12 {
      %c0_10 = arith.constant 0 : index
      %c0_11 = arith.constant 0 : index
      %13 = vector.load %arg7[%c0_10, %c0_11] : memref<32x256xf32, #tpu.memory_space<vmem>>, vector<32x256xf32>
      %c0_12 = arith.constant 0 : index
      %c0_13 = arith.constant 0 : index
      %14 = vector.load %arg5[%c0_12, %c0_13] : memref<1x256xf32, #tpu.memory_space<vmem>>, vector<1x256xf32>
      %15 = vector.broadcast %14 : vector<1x256xf32> to vector<32x256xf32>
      %16 = arith.mulf %13, %15 : vector<32x256xf32>
      %c0_14 = arith.constant 0 : index
      %c0_15 = arith.constant 0 : index
      %17 = vector.load %arg6[%c0_14, %c0_15] : memref<1x256xf32, #tpu.memory_space<vmem>>, vector<1x256xf32>
      %18 = vector.broadcast %17 : vector<1x256xf32> to vector<32x256xf32>
      %19 = arith.addf %16, %18 : vector<32x256xf32>
      %cst_16 = arith.constant 0.000000e+00 : f32
      %20 = vector.broadcast %cst_16 : f32 to vector<32x256xf32>
      %21 = arith.maximumf %19, %20 : vector<32x256xf32>
      %c0_17 = arith.constant 0 : index
      %c0_18 = arith.constant 0 : index
      %22 = vector.load %arg7[%c0_17, %c0_18] : memref<32x256xf32, #tpu.memory_space<vmem>>, vector<32x256xf32>
      tpu.vector_store %arg7[%c0_17, %c0_18], %21 {strides = array<i32>} : memref<32x256xf32, #tpu.memory_space<vmem>>, vector<32x256xf32>,
    } else {
    }
    return
  }
  func.func @transform_0(%arg0: i32, %arg1: i32, %arg2: i32) -> (i32, i32) {
    %c0_i32 = arith.constant 0 : i32
    return %arg0, %arg2 : i32, i32
  }
  func.func @transform_1(%arg0: i32, %arg1: i32, %arg2: i32) -> (i32, i32) {
    %c0_i32 = arith.constant 0 : i32
    return %arg2, %arg1 : i32, i32
  }
  func.func @transform_2(%arg0: i32, %arg1: i32, %arg2: i32) -> (i32, i32) {
    %c0_i32 = arith.constant 0 : i32
    %c0_i32_0 = arith.constant 0 : i32
    return %c0_i32, %arg1 : i32, i32
  }
  func.func @transform_3(%arg0: i32, %arg1: i32, %arg2: i32) -> (i32, i32) {
    %c0_i32 = arith.constant 0 : i32
    %c0_i32_0 = arith.constant 0 : i32
    return %c0_i32, %arg1 : i32, i32
  }
  func.func @transform_4(%arg0: i32, %arg1: i32, %arg2: i32) -> (i32, i32) {
    %c0_i32 = arith.constant 0 : i32
    return %arg0, %arg1 : i32, i32
  }
}

</mosaic_0001>

<bundles_post_ra>
// kernel: tpu_custom_call.1
= control target key start
LH: loop header
LB: loop body
LE: loop exit
PB: predicated region body
PF: predicated region fallthrough
CT: control target
= control target key end

     0   :  { %9 = vsyncpa [#allocation3], 0  ;;  %s485_s0 = inlined_call_operand.hbm [shape: f32[32,64], index: 0, kind: input, shape index: {}]   ;;  %s486_s1 = inlined_call_operand.hbm [shape: bf16[64,256], index: 1, kind: input, shape index: {}]   ;;  %s487_s2 = inlined_call_operand.hbm [shape: f32[1,256], index: 2, kind: input, shape index: {}]   ;;  %s488_s3 = inlined_call_operand.vmem [shape: f32[1,256], index: 3, kind: input, shape index: {}]   ;;  %s489_s4 = inlined_call_operand.hbm [shape: f32[32,256], index: 4, kind: output, shape index: {}]  }
   0x1   :  { %10 = vsyncpa [#allocation6], 0 }
   0x2   :  { %11 = vsyncpa [#allocation4], 0  ;;  %s29_s17 = sshll.u32 %s486_s1, 4  ;;  %s437_s18 = smov [#allocation5]   ;;  %s30_s17 = int_to_ptr.hbm [resolvable:$true] %s29_s17 }
   0x3   :  { %s31_s19 = sshll.u32 %s437_s18, 4  ;;  %s16_s22 = sshll.u32 %s485_s0, 4  ;;  %s32_s19 = int_to_ptr.vmem [resolvable:$true] %s31_s19  ;;  %s17_s22 = int_to_ptr.hbm [resolvable:$true] %s16_s22 }
   0x4   :  { %s438_s23 = smov 128   ;;  %s439_s24 = smov 8  }
   0x5   :  { %37 = dma.hbm_to_vmem [thread:$0]  %s30_s17, 1024, %s32_s19, [#allocation6], %s438_s23, %s438_s23, %s439_s24  }
   0x6   :  { %s440_s25 = smov [#allocation2]   ;;  %s43_s29 = sshll.u32 %s487_s2, 4  ;;  %s44_s29 = int_to_ptr.hbm [resolvable:$true] %s43_s29 }
   0x7   :  { %s18_s26 = sshll.u32 %s440_s25, 4  ;;  %s441_s1 = smov [#allocation7]   ;;  %s19_s26 = int_to_ptr.vmem [resolvable:$true] %s18_s26 }
   0x8   :  { %24 = dma.hbm_to_vmem [thread:$0]  %s17_s22, 512, %s19_s26, [#allocation3], %s438_s23, %s438_s23, %s439_s24  }
   0x9   :  { %s45_s30 = sshll.u32 %s441_s1, 4  ;;  %s46_s30 = int_to_ptr.vmem [resolvable:$true] %s45_s30 }
   0xa   :  { %48 = dma.hbm_to_vmem [thread:$0]  %s44_s29, 32, %s46_s30, [#allocation6]  }
   0xb   :  { %431 = dma.done.wait [#allocation3], 512  }
   0xc   :  { %432 = vsyncadd [#allocation3], 4294966784 }
   0xd   :  { %433 = dma.done.wait [#allocation6], 1056  }
   0xe   :  { %434 = vsyncadd [#allocation6], 4294966240  ;;  %v300_v0 = vld [vmem:[#allocation5 + $0x30] sm:$0xf]  ;;  %v317_v1 = vld [vmem:[#allocation5 + $0x34] sm:$0xf0] }
   0xf   :  { %v316_v2 = vld [vmem:[#allocation5 + $0x34] sm:$0xf]  ;;  %v301_v3 = vor.u32 %v317_v1, %v300_v0  ;;  %v302_v4 = vld [vmem:[#allocation5 + $0x38] sm:$0xf0]  ;;  %v292_v5 = vld [vmem:[#allocation5 + $0x20] sm:$0xf] }
  0x10   :  { %v315_v6 = vld [vmem:[#allocation5 + $0x24] sm:$0xf0]  ;;  %v305_v7 = vor.u32 %v316_v2, %v302_v4  ;;  %v314_v8 = vld [vmem:[#allocation5 + $0x24] sm:$0xf]  ;;  %v294_v9 = vld [vmem:[#allocation5 + $0x28] sm:$0xf0] }
  0x11   :  { %149 = vmatpush.bf16.msra.mxu0 %v301_v3  ;;  %318 = vmatpush.bf16.msra.mxu2 %v301_v3  ;;  %v293_v10 = vor.u32 %v315_v6, %v292_v5  ;;  %v297_v11 = vor.u32 %v314_v8, %v294_v9  ;;  %v284_v12 = vld [vmem:[#allocation5 + $0x10] sm:$0xf]  ;;  %v313_v13 = vld [vmem:[#allocation5 + $0x14] sm:$0xf0]  ;;  %v312_v14 = vld [vmem:[#allocation5 + $0x14] sm:$0xf] }
  0x12   :  { %168 = vmatpush.bf16.msra.mxu1 %v305_v7  ;;  %322 = vmatpush.bf16.msra.mxu3 %v305_v7  ;;  %v286_v15 = vld [vmem:[#allocation5 + $0x18] sm:$0xf0]  ;;  %v285_v16 = vor.u32 %v313_v13, %v284_v12  ;;  %v276_v18 = vld [vmem:[#allocation5] sm:$0xf]  ;;  %v311_v19 = vld [vmem:[#allocation5 + $0x4] sm:$0xf0] }
  0x13   :  { %v289_v17 = vor.u32 %v312_v14, %v286_v15  ;;  %v310_v20 = vld [vmem:[#allocation5 + $0x4] sm:$0xf]  ;;  %v278_v21 = vld [vmem:[#allocation5 + $0x8] sm:$0xf0]  ;;  %v277_v23 = vor.u32 %v311_v19, %v276_v18  ;;  %v86_v25 = vld [vmem:[#allocation2 + $0x10] sm:$0xff]  ;;  %vm138_vm0 = vcmask 523264  }
  0x14   :  { %v84_v22 = vld [vmem:[#allocation2] sm:$0xff]  ;;  %v85_v24 = vld [vmem:[#allocation2 + $0x8] sm:$0xff]  ;;  %v87_v26 = vld [vmem:[#allocation2 + $0x18] sm:$0xff]  ;;  %v281_v27 = vor.u32 %v310_v20, %v278_v21  ;;  %s260_s8 = sshll.u32 %s489_s4, 4  ;;  %s443_s9 = smov 256   ;;  %s261_s8 = int_to_ptr.hbm [resolvable:$true] %s260_s8 }
  0x15   :  { %150 = vmatpush.bf16.msra.mxu0 %v293_v10  ;;  %319 = vmatpush.bf16.msra.mxu2 %v293_v10  ;;  %v88_v28 = vpack.c.bf16 %v85_v24, %v84_v22  ;;  %v89_v29 = vpack.c.bf16 %v87_v26, %v86_v25  ;;  %v210_v30 = vld [vmem:[#allocation7] sm:$0x3]  ;;  %s444_s10 = smov 16  }
  0x16   :  { %169 = vmatpush.bf16.msra.mxu1 %v297_v11  ;;  %323 = vmatpush.bf16.msra.mxu3 %v297_v11  ;;  %v224_v31 = vld [vmem:[%s488_s3] sm:$0x3]  ;;  %v212_v32 = vperm.slane %v210_v30, 0  ;;  %v213_v34 = vperm.slane %v210_v30, 1  ;;  %s442_s3 = smov [#allocation8]  }
  0x17   :  { %v226_v35 = vperm.slane %v224_v31, 0  ;;  %v227_v37 = vperm.slane %v224_v31, 1  ;;  %s258_s5 = sshll.u32 %s442_s3, 4  ;;  %s259_s5 = int_to_ptr.vmem [resolvable:$true] %s258_s5 }
  0x19   :  { %151 = vmatpush.bf16.msra.mxu0 %v285_v16  ;;  %320 = vmatpush.bf16.msra.mxu2 %v285_v16 }
  0x1a   :  { %170 = vmatpush.bf16.msra.mxu1 %v289_v17  ;;  %324 = vmatpush.bf16.msra.mxu3 %v289_v17 }
  0x1d   :  { %152 = vmatpush.bf16.msra.mxu0 %v277_v23  ;;  %321 = vmatpush.bf16.msra.mxu2 %v277_v23 }
  0x1e   :  { %171 = vmatpush.bf16.msra.mxu1 %v281_v27  ;;  %325 = vmatpush.bf16.msra.mxu3 %v281_v27 }
  0x20   :  { %306 = vmatmul.msk.bf16.vlgmr.msra.gmra.mxu0 %vm138_vm0, %v88_v28  ;;  %307 = vmatmul.msk.bf16.vlgmr.msra.gmra.mxu2 %vm138_vm0, %v89_v29 }
  0x21   :  { %308 = vmatmul.msk.bf16.vlgmr.msra.gmra.mxu1 %vm138_vm0, %v88_v28  ;;  %309 = vmatmul.msk.bf16.vlgmr.msra.gmra.mxu3 %vm138_vm0, %v89_v29 }
  0x9d   :  { %v154_v33 = vpop.f32.mrf.mxu0 }
  0x9e   :  { %v173_v36 = vpop.f32.mrf.mxu1  ;;  %v216_v38 = vmul.f32 %v212_v32, %v154_v33 }
  0x9f   :  { %v217_v39 = vmul.f32 %v213_v34, %v173_v36 }
  0xa0   :  { %v230_v40 = vadd.f32 %v226_v35, %v216_v38 }
  0xa1   :  { %v231_v41 = vadd.f32 %v227_v37, %v217_v39 }
  0xa2   :  { %v238_v43 = vmax.f32 %v230_v40, 0.0 }
  0xa3   :  { %v159_v42 = vpop.f32.mrf.mxu2  ;;  %v239_v45 = vmax.f32 %v231_v41, 0.0 }
  0xa4   :  { %v178_v44 = vpop.f32.mrf.mxu3  ;;  %246 = vst [vmem:[#allocation8] sm:$0xff] %v238_v43  ;;  %v220_v47 = vmul.f32 %v212_v32, %v159_v42 }
  0xa5   :  { %v156_v46 = vpop.f32.mrf.mxu0  ;;  %247 = vst [vmem:[#allocation8 + $0x8] sm:$0xff] %v239_v45  ;;  %v221_v49 = vmul.f32 %v213_v34, %v178_v44 }
  0xa6   :  { %v175_v48 = vpop.f32.mrf.mxu1  ;;  %v234_v50 = vadd.f32 %v226_v35, %v220_v47  ;;  %v218_v51 = vmul.f32 %v212_v32, %v156_v46 }
  0xa7   :  { %v235_v52 = vadd.f32 %v227_v37, %v221_v49  ;;  %v219_v53 = vmul.f32 %v213_v34, %v175_v48 }
  0xa8   :  { %v242_v54 = vmax.f32 %v234_v50, 0.0  ;;  %v232_v55 = vadd.f32 %v226_v35, %v218_v51 }
  0xa9   :  { %v243_v56 = vmax.f32 %v235_v52, 0.0  ;;  %v233_v57 = vadd.f32 %v227_v37, %v219_v53 }
  0xaa   :  { %250 = vst [vmem:[#allocation8 + $0x20] sm:$0xff] %v242_v54  ;;  %v240_v59 = vmax.f32 %v232_v55, 0.0 }
  0xab   :  { %v161_v58 = vpop.f32.mrf.mxu2  ;;  %251 = vst [vmem:[#allocation8 + $0x28] sm:$0xff] %v243_v56  ;;  %v241_v61 = vmax.f32 %v233_v57, 0.0 }
  0xac   :  { %v180_v60 = vpop.f32.mrf.mxu3  ;;  %248 = vst [vmem:[#allocation8 + $0x10] sm:$0xff] %v240_v59  ;;  %v222_v62 = vmul.f32 %v212_v32, %v161_v58 }
  0xad   :  { %249 = vst [vmem:[#allocation8 + $0x18] sm:$0xff] %v241_v61  ;;  %v223_v63 = vmul.f32 %v213_v34, %v180_v60 }
  0xae   :  { %v236_v0 = vadd.f32 %v226_v35, %v222_v62 }
  0xaf   :  { %v237_v1 = vadd.f32 %v227_v37, %v223_v63 }
  0xb0   :  { %v244_v2 = vmax.f32 %v236_v0, 0.0 }
  0xb1   :  { %v245_v3 = vmax.f32 %v237_v1, 0.0 }
  0xb2   :  { %252 = vst [vmem:[#allocation8 + $0x30] sm:$0xff] %v244_v2 }
  0xb3   :  { %253 = vst [vmem:[#allocation8 + $0x38] sm:$0xff] %v245_v3 }
  0xb4   :  { %266 = dma.vmem_to_hbm [thread:$0]  %s259_s5, 1024, %s261_s8, [#allocation4], %s443_s9, %s443_s9, %s444_s10  }
  0xb5   :  { %435 = dma.done.wait [#allocation4], 1024  }
  0xb6   :  { %436 = vsyncadd [#allocation4], 4294966272 }
  0xb7   :  { %271 = vsyncpa [#allocation3], 1 }
  0xb8   :  { %272 = vsyncpa [#allocation6], 1 }
  0xb9   :  { %273 = vsyncpa [#allocation4], 1 }

</bundles_post_ra>
